<compile_context>
chip_gen: v5e
topology: v5e:2x2
jax: 0.10.0
libtpu: 0.0.40
codegen_flags: <defaults>
</compile_context>

<pallas_src>
import functools
from math import sqrt

import jax
import jax.numpy as jnp
from jax import lax
from jax.experimental import pallas as pl
from jax.experimental.pallas import tpu as pltpu


def _reprog_attn_kernel(q_ref, k_ref, v_ref, o_ref, *, n_heads, head_dim):
    # q_ref: (H, TL, E) bf16   -- one batch element / one L tile, head-major
    # k_ref: (H, S,  E) bf16   -- grid-invariant (DMA'd once, resident)
    # v_ref: (H, S,  E) bf16
    # o_ref: (TL, H*E) bf16    -- lane-dense output block
    def one_head(q_h, k_h, v_h):
        # scores[l, s] = sum_e q[l, e] * k[s, e]; scale already folded into Q.
        scores = lax.dot_general(
            q_h, k_h,
            dimension_numbers=(((1,), (1,)), ((), ())),
            preferred_element_type=jnp.float32,
        )                                                     # (TL, S) f32
        # numerically-stable softmax over S, in f32 (bf16 elementwise is a loss on v5e)
        m = jnp.max(scores, axis=-1, keepdims=True)
        e = jnp.exp(scores - m)
        denom = jnp.sum(e, axis=-1, keepdims=True)
        a = (e * pl.reciprocal(denom, approx=True)).astype(v_h.dtype)   # (TL, S) bf16
        # out[l, e] = sum_s a[l, s] * v[s, e]
        return jnp.dot(a, v_h, preferred_element_type=jnp.float32)      # (TL, E) f32

    if head_dim % 128 == 0:
        # Dynamic lane offsets are multiples of 128 -> fori_loop keeps vreg pressure
        # bounded for large H while stores stay aligned.
        def body(h, carry):
            out_h = one_head(q_ref[h], k_ref[h], v_ref[h])
            lo = pl.multiple_of(h * head_dim, head_dim)
            o_ref[:, pl.ds(lo, head_dim)] = out_h.astype(o_ref.dtype)
            return carry
        lax.fori_loop(0, n_heads, body, 0, unroll=True)
    else:
        # head_dim < 128: keep lane offsets static (robust lowering); per-head stores
        # still free each head's partial result immediately (no concatenate epilogue).
        for h in range(n_heads):
            out_h = one_head(q_ref[h], k_ref[h], v_ref[h])
            lo = h * head_dim
            o_ref[:, lo:lo + head_dim] = out_h.astype(o_ref.dtype)


def _choose_l_tile(L):
    for tl in (512, 256, 128, 64, 32, 16):
        if L >= tl and L % tl == 0:
            return tl
    return L


def reprogramming_attention(q_bhle, k_hse, v_hse):
    """q: (B, H, L, E) bf16; k, v: (H, S, E) bf16  ->  (B, L, H*E) bf16.

    Softmax scale is assumed already folded into q.
    """
    B, H, L, E = q_bhle.shape
    S = k_hse.shape[1]
    HE = H * E
    TL = _choose_l_tile(L)
    n_l_tiles = L // TL

    kernel = functools.partial(_reprog_attn_kernel, n_heads=H, head_dim=E)

    flops = 4 * B * H * L * S * E                      # QK^T + A@V
    transcendentals = B * H * L * S                    # exp
    bytes_accessed = 2 * (B * H * L * E + 2 * H * S * E + B * L * HE)  # bf16 I/O

    return pl.pallas_call(
        kernel,
        out_shape=jax.ShapeDtypeStruct((B, L, HE), jnp.bfloat16),
        grid_spec=pltpu.PrefetchScalarGridSpec(
            num_scalar_prefetch=0,
            grid=(B, n_l_tiles),
            in_specs=[
                # batch dim squeezed; heads kept as a leading, sublane-contiguous axis
                pl.BlockSpec((None, H, TL, E), lambda b, l: (b, 0, l, 0)),
                # K/V: block index constant across the grid -> DMA'd once, resident
                pl.BlockSpec((H, S, E), lambda b, l: (0, 0, 0)),
                pl.BlockSpec((H, S, E), lambda b, l: (0, 0, 0)),
            ],
            out_specs=pl.BlockSpec((None, TL, HE), lambda b, l: (b, l, 0)),
        ),
        compiler_params=pltpu.CompilerParams(
            dimension_semantics=("parallel", "parallel"),
        ),
        cost_estimate=pl.CostEstimate(
            flops=flops,
            transcendentals=transcendentals,
            bytes_accessed=bytes_accessed,
        ),
    )(q_bhle, k_hse, v_hse)


def init_params(key, d_model, n_heads, d_keys, d_llm):
    """Deterministic nn.Linear-style params: weight (out, in), bias (out,)."""
    dk_h = d_keys * n_heads
    ks = jax.random.split(key, 8)

    def linear(kw, kb, out_f, in_f):
        bound = 1.0 / sqrt(in_f)
        w = jax.random.uniform(kw, (out_f, in_f), jnp.float32, -bound, bound)
        b = jax.random.uniform(kb, (out_f,), jnp.float32, -bound, bound)
        return w, b

    return {
        "query": linear(ks[0], ks[1], dk_h, d_model),
        "key": linear(ks[2], ks[3], dk_h, d_llm),
        "value": linear(ks[4], ks[5], dk_h, d_llm),
        "out": linear(ks[6], ks[7], d_llm, dk_h),
    }


def reprogramming_layer_forward(params, target_embedding, source_embedding,
                                value_embedding, n_heads):
    wq, bq = params["query"]
    wk, bk = params["key"]
    wv, bv = params["value"]
    wo, bo = params["out"]

    B, L, _ = target_embedding.shape
    S, _ = source_embedding.shape
    H = n_heads
    HE = wq.shape[0]
    E = HE // H
    scale = 1.0 / sqrt(E)

    bf = jnp.bfloat16
    # Fold the softmax 1/sqrt(E) scale into the Q projection (exact) and produce
    # bf16 Q/K/V directly from the projection matmuls (no separate cast passes).
    q = jnp.dot(target_embedding.astype(bf), (wq * scale).astype(bf).T) \
        + (bq * scale).astype(bf)                                   # (B, L, H*E) bf16
    k = jnp.dot(source_embedding.astype(bf), wk.astype(bf).T) + bk.astype(bf)  # (S, H*E)
    v = jnp.dot(value_embedding.astype(bf), wv.astype(bf).T) + bv.astype(bf)   # (S, H*E)

    # Head-major layouts for the kernel (cheap one-time XLA reshuffles, outside the
    # hot loop): Q -> (B, H, L, E), K/V -> (H, S, E).
    q_bhle = q.reshape(B, L, H, E).transpose(0, 2, 1, 3)
    k_hse = k.reshape(S, H, E).transpose(1, 0, 2)
    v_hse = v.reshape(S, H, E).transpose(1, 0, 2)

    out = reprogramming_attention(q_bhle, k_hse, v_hse)             # (B, L, H*E) bf16

    # Out-projection: bf16 operands, f32 accumulation.
    return jnp.dot(out, wo.astype(bf).T, preferred_element_type=jnp.float32) + bo


def _reference_forward(params, target_embedding, source_embedding,
                       value_embedding, n_heads):
    """Pure-JAX f32 reference mirroring the PyTorch module (eval mode)."""
    B, L, _ = target_embedding.shape
    S, _ = source_embedding.shape
    H = n_heads
    wq, bq = params["query"]
    wk, bk = params["key"]
    wv, bv = params["value"]
    wo, bo = params["out"]
    q = (target_embedding @ wq.T + bq).reshape(B, L, H, -1)
    k = (source_embedding @ wk.T + bk).reshape(S, H, -1)
    v = (value_embedding @ wv.T + bv).reshape(S, H, -1)
    E = q.shape[-1]
    scores = jnp.einsum('blhe,she->bhls', q, k)
    a = jax.nn.softmax(scores / sqrt(E), axis=-1)
    out = jnp.einsum('bhls,she->blhe', a, v).reshape(B, L, -1)
    return out @ wo.T + bo


if __name__ == "__main__":
    # Small shapes consistent with the module's forward.
    B, L, S = 2, 8, 16
    d_model, n_heads, d_llm = 32, 4, 64
    d_keys = d_model // n_heads  # E = 8

    key = jax.random.PRNGKey(0)
    k_params, k_tgt, k_src, k_val = jax.random.split(key, 4)

    params = init_params(k_params, d_model, n_heads, d_keys, d_llm)
    target_embedding = jax.random.normal(k_tgt, (B, L, d_model), jnp.float32)
    source_embedding = jax.random.normal(k_src, (S, d_llm), jnp.float32)
    value_embedding = jax.random.normal(k_val, (S, d_llm), jnp.float32)

    fwd = jax.jit(functools.partial(reprogramming_layer_forward, n_heads=n_heads))
    out = fwd(params, target_embedding, source_embedding, value_embedding)
    out = jax.block_until_ready(out)

    ref = _reference_forward(params, target_embedding, source_embedding,
                             value_embedding, n_heads)
    assert out.shape == (B, L, d_llm)
    # bf16 projections / MXU operands / bf16 kernel output + approx reciprocal loosen
    # agreement vs. the pure-f32 reference; real bugs would show O(1) errors.
    assert jnp.allclose(out, ref, atol=5e-2, rtol=5e-2)

    print("KERNEL_OK")
</pallas_src>

<mosaic_0001>
module attributes {stable_mosaic.version = 11 : i64} {
  func.func @_reprog_attn_kernel(%arg0: i32, %arg1: i32, %arg2: memref<1x4x8x8xbf16, #tpu.memory_space<vmem>>, %arg3: memref<4x16x8xbf16, #tpu.memory_space<vmem>>, %arg4: memref<4x16x8xbf16, #tpu.memory_space<vmem>>, %arg5: memref<1x8x32xbf16, #tpu.memory_space<vmem>>) attributes {dimension_semantics = [#tpu.dimension_semantics<parallel>, #tpu.dimension_semantics<parallel>], iteration_bounds = array<i64: 2, 1>, scalar_prefetch = 0 : i64, scratch_operands = 0 : i64, tpu.core_type = #tpu.core_type<tc>, window_params = [{transform_indices = @transform_0, window_bounds = array<i64: 1, 4, 8, 8>}, {pipeline_mode = #tpu.pipeline_mode<synchronous>, transform_indices = @transform_1, window_bounds = array<i64: 4, 16, 8>}, {pipeline_mode = #tpu.pipeline_mode<synchronous>, transform_indices = @transform_2, window_bounds = array<i64: 4, 16, 8>}, {transform_indices = @transform_3, window_bounds = array<i64: 1, 8, 32>}]} {
    %c0 = arith.constant 0 : index
    %c0_0 = arith.constant 0 : index
    %c0_1 = arith.constant 0 : index
    %c0_2 = arith.constant 0 : index
    %0 = vector.load %arg2[%c0, %c0_0, %c0_1, %c0_2] : memref<1x4x8x8xbf16, #tpu.memory_space<vmem>>, vector<1x1x8x8xbf16>
    %1 = vector.shape_cast %0 : vector<1x1x8x8xbf16> to vector<8x8xbf16>
    %c0_3 = arith.constant 0 : index
    %c0_4 = arith.constant 0 : index
    %c0_5 = arith.constant 0 : index
    %2 = vector.load %arg3[%c0_3, %c0_4, %c0_5] : memref<4x16x8xbf16, #tpu.memory_space<vmem>>, vector<1x16x8xbf16>
    %3 = vector.shape_cast %2 : vector<1x16x8xbf16> to vector<16x8xbf16>
    %c0_6 = arith.constant 0 : index
    %c0_7 = arith.constant 0 : index
    %c0_8 = arith.constant 0 : index
    %4 = vector.load %arg4[%c0_6, %c0_7, %c0_8] : memref<4x16x8xbf16, #tpu.memory_space<vmem>>, vector<1x16x8xbf16>
    %5 = vector.shape_cast %4 : vector<1x16x8xbf16> to vector<16x8xbf16>
    %cst = arith.constant dense<0.000000e+00> : vector<8x16xf32>
    %6 = tpu.matmul %1, %3, %cst {dimension_numbers = #tpu.dot_dimension_numbers<[1], [1], [0], [0], [0, 0, 1, 0], [], []>} : vector<8x8xbf16>, vector<16x8xbf16>, vector<8x16xf32> -> vector<8x16xf32>
    %cst_9 = arith.constant dense<0xFF800000> : vector<8xf32>
    %7 = vector.multi_reduction <maximumf>, %6, %cst_9 [1] : vector<8x16xf32> to vector<8xf32>
    %8 = vector.shape_cast %7 : vector<8xf32> to vector<8x1xf32>
    %9 = vector.broadcast %8 : vector<8x1xf32> to vector<8x16xf32>
    %10 = arith.subf %6, %9 : vector<8x16xf32>
    %11 = math.exp %10 : vector<8x16xf32>
    %cst_10 = arith.constant dense<0.000000e+00> : vector<8xf32>
    %12 = vector.multi_reduction <add>, %11, %cst_10 [1] : vector<8x16xf32> to vector<8xf32>
    %13 = vector.shape_cast %12 : vector<8xf32> to vector<8x1xf32>
    %14 = tpu.reciprocal %13 {approx = true} : vector<8x1xf32> -> vector<8x1xf32>
    %15 = vector.broadcast %14 : vector<8x1xf32> to vector<8x16xf32>
    %16 = arith.mulf %11, %15 : vector<8x16xf32>
    %17 = arith.truncf %16 : vector<8x16xf32> to vector<8x16xbf16>
    %cst_11 = arith.constant dense<0.000000e+00> : vector<8x8xf32>
    %18 = tpu.matmul %17, %5, %cst_11 {dimension_numbers = #tpu.dot_dimension_numbers<[1], [0], [0], [1], [0, 0, 1, 1], [], []>} : vector<8x16xbf16>, vector<16x8xbf16>, vector<8x8xf32> -> vector<8x8xf32>
    %19 = arith.truncf %18 : vector<8x8xf32> to vector<8x8xbf16>
    %c0_12 = arith.constant 0 : index
    %c0_13 = arith.constant 0 : index
    %c0_14 = arith.constant 0 : index
    %20 = vector.load %arg5[%c0_12, %c0_13, %c0_14] : memref<1x8x32xbf16, #tpu.memory_space<vmem>>, vector<1x8x8xbf16>
    %21 = vector.shape_cast %20 : vector<1x8x8xbf16> to vector<8x8xbf16>
    %22 = vector.shape_cast %19 : vector<8x8xbf16> to vector<1x8x8xbf16>
    tpu.vector_store %arg5[%c0_12, %c0_13, %c0_14], %22 {strides = array<i32>} : memref<1x8x32xbf16, #tpu.memory_space<vmem>>, vector<1x8x8xbf16>,
    %c0_15 = arith.constant 0 : index
    %c1 = arith.constant 1 : index
    %c0_16 = arith.constant 0 : index
    %c0_17 = arith.constant 0 : index
    %23 = vector.load %arg2[%c0_15, %c1, %c0_16, %c0_17] : memref<1x4x8x8xbf16, #tpu.memory_space<vmem>>, vector<1x1x8x8xbf16>
    %24 = vector.shape_cast %23 : vector<1x1x8x8xbf16> to vector<8x8xbf16>
    %c1_18 = arith.constant 1 : index
    %c0_19 = arith.constant 0 : index
    %c0_20 = arith.constant 0 : index
    %25 = vector.load %arg3[%c1_18, %c0_19, %c0_20] : memref<4x16x8xbf16, #tpu.memory_space<vmem>>, vector<1x16x8xbf16>
    %26 = vector.shape_cast %25 : vector<1x16x8xbf16> to vector<16x8xbf16>
    %c1_21 = arith.constant 1 : index
    %c0_22 = arith.constant 0 : index
    %c0_23 = arith.constant 0 : index
    %27 = vector.load %arg4[%c1_21, %c0_22, %c0_23] : memref<4x16x8xbf16, #tpu.memory_space<vmem>>, vector<1x16x8xbf16>
    %28 = vector.shape_cast %27 : vector<1x16x8xbf16> to vector<16x8xbf16>
    %cst_24 = arith.constant dense<0.000000e+00> : vector<8x16xf32>
    %29 = tpu.matmul %24, %26, %cst_24 {dimension_numbers = #tpu.dot_dimension_numbers<[1], [1], [0], [0], [0, 0, 1, 0], [], []>} : vector<8x8xbf16>, vector<16x8xbf16>, vector<8x16xf32> -> vector<8x16xf32>
    %cst_25 = arith.constant dense<0xFF800000> : vector<8xf32>
    %30 = vector.multi_reduction <maximumf>, %29, %cst_25 [1] : vector<8x16xf32> to vector<8xf32>
    %31 = vector.shape_cast %30 : vector<8xf32> to vector<8x1xf32>
    %32 = vector.broadcast %31 : vector<8x1xf32> to vector<8x16xf32>
    %33 = arith.subf %29, %32 : vector<8x16xf32>
    %34 = math.exp %33 : vector<8x16xf32>
    %cst_26 = arith.constant dense<0.000000e+00> : vector<8xf32>
    %35 = vector.multi_reduction <add>, %34, %cst_26 [1] : vector<8x16xf32> to vector<8xf32>
    %36 = vector.shape_cast %35 : vector<8xf32> to vector<8x1xf32>
    %37 = tpu.reciprocal %36 {approx = true} : vector<8x1xf32> -> vector<8x1xf32>
    %38 = vector.broadcast %37 : vector<8x1xf32> to vector<8x16xf32>
    %39 = arith.mulf %34, %38 : vector<8x16xf32>
    %40 = arith.truncf %39 : vector<8x16xf32> to vector<8x16xbf16>
    %cst_27 = arith.constant dense<0.000000e+00> : vector<8x8xf32>
    %41 = tpu.matmul %40, %28, %cst_27 {dimension_numbers = #tpu.dot_dimension_numbers<[1], [0], [0], [1], [0, 0, 1, 1], [], []>} : vector<8x16xbf16>, vector<16x8xbf16>, vector<8x8xf32> -> vector<8x8xf32>
    %42 = arith.truncf %41 : vector<8x8xf32> to vector<8x8xbf16>
    %c0_28 = arith.constant 0 : index
    %c0_29 = arith.constant 0 : index
    %c8 = arith.constant 8 : index
    %43 = vector.load %arg5[%c0_28, %c0_29, %c8] : memref<1x8x32xbf16, #tpu.memory_space<vmem>>, vector<1x8x8xbf16>
    %44 = vector.shape_cast %43 : vector<1x8x8xbf16> to vector<8x8xbf16>
    %45 = vector.shape_cast %42 : vector<8x8xbf16> to vector<1x8x8xbf16>
    tpu.vector_store %arg5[%c0_28, %c0_29, %c8], %45 {strides = array<i32>} : memref<1x8x32xbf16, #tpu.memory_space<vmem>>, vector<1x8x8xbf16>,
    %c0_30 = arith.constant 0 : index
    %c2 = arith.constant 2 : index
    %c0_31 = arith.constant 0 : index
    %c0_32 = arith.constant 0 : index
    %46 = vector.load %arg2[%c0_30, %c2, %c0_31, %c0_32] : memref<1x4x8x8xbf16, #tpu.memory_space<vmem>>, vector<1x1x8x8xbf16>
    %47 = vector.shape_cast %46 : vector<1x1x8x8xbf16> to vector<8x8xbf16>
    %c2_33 = arith.constant 2 : index
    %c0_34 = arith.constant 0 : index
    %c0_35 = arith.constant 0 : index
    %48 = vector.load %arg3[%c2_33, %c0_34, %c0_35] : memref<4x16x8xbf16, #tpu.memory_space<vmem>>, vector<1x16x8xbf16>
    %49 = vector.shape_cast %48 : vector<1x16x8xbf16> to vector<16x8xbf16>
    %c2_36 = arith.constant 2 : index
    %c0_37 = arith.constant 0 : index
    %c0_38 = arith.constant 0 : index
    %50 = vector.load %arg4[%c2_36, %c0_37, %c0_38] : memref<4x16x8xbf16, #tpu.memory_space<vmem>>, vector<1x16x8xbf16>
    %51 = vector.shape_cast %50 : vector<1x16x8xbf16> to vector<16x8xbf16>
    %cst_39 = arith.constant dense<0.000000e+00> : vector<8x16xf32>
    %52 = tpu.matmul %47, %49, %cst_39 {dimension_numbers = #tpu.dot_dimension_numbers<[1], [1], [0], [0], [0, 0, 1, 0], [], []>} : vector<8x8xbf16>, vector<16x8xbf16>, vector<8x16xf32> -> vector<8x16xf32>
    %cst_40 = arith.constant dense<0xFF800000> : vector<8xf32>
    %53 = vector.multi_reduction <maximumf>, %52, %cst_40 [1] : vector<8x16xf32> to vector<8xf32>
    %54 = vector.shape_cast %53 : vector<8xf32> to vector<8x1xf32>
    %55 = vector.broadcast %54 : vector<8x1xf32> to vector<8x16xf32>
    %56 = arith.subf %52, %55 : vector<8x16xf32>
    %57 = math.exp %56 : vector<8x16xf32>
    %cst_41 = arith.constant dense<0.000000e+00> : vector<8xf32>
    %58 = vector.multi_reduction <add>, %57, %cst_41 [1] : vector<8x16xf32> to vector<8xf32>
    %59 = vector.shape_cast %58 : vector<8xf32> to vector<8x1xf32>
    %60 = tpu.reciprocal %59 {approx = true} : vector<8x1xf32> -> vector<8x1xf32>
    %61 = vector.broadcast %60 : vector<8x1xf32> to vector<8x16xf32>
    %62 = arith.mulf %57, %61 : vector<8x16xf32>
    %63 = arith.truncf %62 : vector<8x16xf32> to vector<8x16xbf16>
    %cst_42 = arith.constant dense<0.000000e+00> : vector<8x8xf32>
    %64 = tpu.matmul %63, %51, %cst_42 {dimension_numbers = #tpu.dot_dimension_numbers<[1], [0], [0], [1], [0, 0, 1, 1], [], []>} : vector<8x16xbf16>, vector<16x8xbf16>, vector<8x8xf32> -> vector<8x8xf32>
    %65 = arith.truncf %64 : vector<8x8xf32> to vector<8x8xbf16>
    %c0_43 = arith.constant 0 : index
    %c0_44 = arith.constant 0 : index
    %c16 = arith.constant 16 : index
    %66 = vector.load %arg5[%c0_43, %c0_44, %c16] : memref<1x8x32xbf16, #tpu.memory_space<vmem>>, vector<1x8x8xbf16>
    %67 = vector.shape_cast %66 : vector<1x8x8xbf16> to vector<8x8xbf16>
    %68 = vector.shape_cast %65 : vector<8x8xbf16> to vector<1x8x8xbf16>
    tpu.vector_store %arg5[%c0_43, %c0_44, %c16], %68 {strides = array<i32>} : memref<1x8x32xbf16, #tpu.memory_space<vmem>>, vector<1x8x8xbf16>,
    %c0_45 = arith.constant 0 : index
    %c3 = arith.constant 3 : index
    %c0_46 = arith.constant 0 : index
    %c0_47 = arith.constant 0 : index
    %69 = vector.load %arg2[%c0_45, %c3, %c0_46, %c0_47] : memref<1x4x8x8xbf16, #tpu.memory_space<vmem>>, vector<1x1x8x8xbf16>
    %70 = vector.shape_cast %69 : vector<1x1x8x8xbf16> to vector<8x8xbf16>
    %c3_48 = arith.constant 3 : index
    %c0_49 = arith.constant 0 : index
    %c0_50 = arith.constant 0 : index
    %71 = vector.load %arg3[%c3_48, %c0_49, %c0_50] : memref<4x16x8xbf16, #tpu.memory_space<vmem>>, vector<1x16x8xbf16>
    %72 = vector.shape_cast %71 : vector<1x16x8xbf16> to vector<16x8xbf16>
    %c3_51 = arith.constant 3 : index
    %c0_52 = arith.constant 0 : index
    %c0_53 = arith.constant 0 : index
    %73 = vector.load %arg4[%c3_51, %c0_52, %c0_53] : memref<4x16x8xbf16, #tpu.memory_space<vmem>>, vector<1x16x8xbf16>
    %74 = vector.shape_cast %73 : vector<1x16x8xbf16> to vector<16x8xbf16>
    %cst_54 = arith.constant dense<0.000000e+00> : vector<8x16xf32>
    %75 = tpu.matmul %70, %72, %cst_54 {dimension_numbers = #tpu.dot_dimension_numbers<[1], [1], [0], [0], [0, 0, 1, 0], [], []>} : vector<8x8xbf16>, vector<16x8xbf16>, vector<8x16xf32> -> vector<8x16xf32>
    %cst_55 = arith.constant dense<0xFF800000> : vector<8xf32>
    %76 = vector.multi_reduction <maximumf>, %75, %cst_55 [1] : vector<8x16xf32> to vector<8xf32>
    %77 = vector.shape_cast %76 : vector<8xf32> to vector<8x1xf32>
    %78 = vector.broadcast %77 : vector<8x1xf32> to vector<8x16xf32>
    %79 = arith.subf %75, %78 : vector<8x16xf32>
    %80 = math.exp %79 : vector<8x16xf32>
    %cst_56 = arith.constant dense<0.000000e+00> : vector<8xf32>
    %81 = vector.multi_reduction <add>, %80, %cst_56 [1] : vector<8x16xf32> to vector<8xf32>
    %82 = vector.shape_cast %81 : vector<8xf32> to vector<8x1xf32>
    %83 = tpu.reciprocal %82 {approx = true} : vector<8x1xf32> -> vector<8x1xf32>
    %84 = vector.broadcast %83 : vector<8x1xf32> to vector<8x16xf32>
    %85 = arith.mulf %80, %84 : vector<8x16xf32>
    %86 = arith.truncf %85 : vector<8x16xf32> to vector<8x16xbf16>
    %cst_57 = arith.constant dense<0.000000e+00> : vector<8x8xf32>
    %87 = tpu.matmul %86, %74, %cst_57 {dimension_numbers = #tpu.dot_dimension_numbers<[1], [0], [0], [1], [0, 0, 1, 1], [], []>} : vector<8x16xbf16>, vector<16x8xbf16>, vector<8x8xf32> -> vector<8x8xf32>
    %88 = arith.truncf %87 : vector<8x8xf32> to vector<8x8xbf16>
    %c0_58 = arith.constant 0 : index
    %c0_59 = arith.constant 0 : index
    %c24 = arith.constant 24 : index
    %89 = vector.load %arg5[%c0_58, %c0_59, %c24] : memref<1x8x32xbf16, #tpu.memory_space<vmem>>, vector<1x8x8xbf16>
    %90 = vector.shape_cast %89 : vector<1x8x8xbf16> to vector<8x8xbf16>
    %91 = vector.shape_cast %88 : vector<8x8xbf16> to vector<1x8x8xbf16>
    tpu.vector_store %arg5[%c0_58, %c0_59, %c24], %91 {strides = array<i32>} : memref<1x8x32xbf16, #tpu.memory_space<vmem>>, vector<1x8x8xbf16>,
    return
  }
  func.func @transform_0(%arg0: i32, %arg1: i32) -> (i32, i32, i32, i32) {
    %c0_i32 = arith.constant 0 : i32
    %c0_i32_0 = arith.constant 0 : i32
    %c0_i32_1 = arith.constant 0 : i32
    return %arg0, %c0_i32, %arg1, %c0_i32_0 : i32, i32, i32, i32
  }
  func.func @transform_1(%arg0: i32, %arg1: i32) -> (i32, i32, i32) {
    %c0_i32 = arith.constant 0 : i32
    %c0_i32_0 = arith.constant 0 : i32
    %c0_i32_1 = arith.constant 0 : i32
    %c0_i32_2 = arith.constant 0 : i32
    return %c0_i32, %c0_i32_0, %c0_i32_1 : i32, i32, i32
  }
  func.func @transform_2(%arg0: i32, %arg1: i32) -> (i32, i32, i32) {
    %c0_i32 = arith.constant 0 : i32
    %c0_i32_0 = arith.constant 0 : i32
    %c0_i32_1 = arith.constant 0 : i32
    %c0_i32_2 = arith.constant 0 : i32
    return %c0_i32, %c0_i32_0, %c0_i32_1 : i32, i32, i32
  }
  func.func @transform_3(%arg0: i32, %arg1: i32) -> (i32, i32, i32) {
    %c0_i32 = arith.constant 0 : i32
    %c0_i32_0 = arith.constant 0 : i32
    return %arg0, %arg1, %c0_i32 : i32, i32, i32
  }
}

</mosaic_0001>

<bundles_post_ra>
// kernel: reprogramming_layer_forward.1
= control target key start
LH: loop header
LB: loop body
LE: loop exit
PB: predicated region body
PF: predicated region fallthrough
CT: control target
= control target key end

     0   :  { %s729_s12 = smov 0   ;;  %s731_s13 = smov 0   ;;  %s822_s0 = inlined_call_operand.vmem [shape: bf16[2,4,8,8], index: 0, kind: input, shape index: {}]   ;;  %s823_s1 = inlined_call_operand.vmem [shape: bf16[4,16,8], index: 1, kind: input, shape index: {}]   ;;  %s824_s2 = inlined_call_operand.vmem [shape: bf16[4,16,8], index: 2, kind: input, shape index: {}]   ;;  %s825_s3 = inlined_call_operand.vmem [shape: bf16[2,8,32], index: 3, kind: output, shape index: {}]  }
   0x1   :  { %s733_s14 = smov 0  }
   0x2 LB: > { %s25_s15 = sadd.s32 1, %s700_s13  ;;  %p569_p0 = scmp.ge.s32.totalorder %s704_s14, 1  ;;  %s704_s14 = sphi %s733_s14, %s13_s14   ;;  %s700_s13 = sphi %s731_s13, %s827_s13   ;;  %s696_s12 = sphi %s729_s12, %s826_s12  }
   0x3   : > { %p27_p1 = scmp.ge.s32.totalorder %s25_s15, 2  ;;  %p156_p2 = scmp.lt.s32.totalorder %s704_s14, 3 }
   0x5   : > { %s829_s15 = smov (%p27_p1, %s25_s15), 0  ;;  %p157_p3 = pnand %p569_p0, %p156_p2 }
   0x6   : > { %p185_p4 = scmp.lt.s32.totalorder (!%p157_p3), %s696_s12, 1  ;;  %s706_s9 = smov (!%p157_p3), 8  }
   0x7   : > { %160 = sbr.rel (%p157_p3) target bundleno = 1052 (0x41c), region = 32  ;;  %s707_s17 = smov (!%p157_p3), 24  }
   0x8   : > { %s708_s18 = smov (!%p157_p3), 16  }
   0xc   : > { %v631_v0 = vld [vmem:[%s823_s1] sm:$0xff]  ;;  %vm211_vm0 = vcmask 64512   ;;  %v633_v1 = vld [vmem:[%s823_s1 + $0x8] sm:$0xff]  ;;  %s831_s12 = smov (!%p185_p4, %s696_s12), 1  ;;  %vm231_vm1 = vcmask 130048   ;;  %v637_v9 = vld [vmem:[%s823_s1 + $0x18] sm:$0xff] }
   0xd   : > { %v216_v2 = vsel %vm211_vm0, %v631_v0, 0  ;;  %v286_v3 = vsel %vm211_vm0, %v633_v1, 0  ;;  %s630_s20 = sshll.u32 %s831_s12, 4  ;;  %v432_v10 = vsel %vm211_vm0, %v637_v9, 0  ;;  %v632_v20 = vld [vmem:[%s824_s2] sm:$0xff]  ;;  %v635_v26 = vld [vmem:[%s823_s1 + $0x10] sm:$0xff] }
   0xe   : > { %225 = vmatpush.bf16.xpose.msra.mxu0 %v216_v2  ;;  %295 = vmatpush.bf16.xpose.msra.mxu2 %v286_v3  ;;  %s761_s23 = scalar_lea.vmem %s822_s0, %s630_s20  ;;  %v359_v27 = vsel %vm211_vm0, %v635_v26, 0  ;;  %v634_v39 = vld [vmem:[%s824_s2 + $0x8] sm:$0xff]  ;;  %s572_s5 = sshll.u32 %s831_s12, 2  ;;  %vm267_vm2 = vcmask 60416   ;;  %v638_v55 = vld [vmem:[%s824_s2 + $0x18] sm:$0xff]  ;;  %v636_v1 = vld [vmem:[%s824_s2 + $0x10] sm:$0xff] }
   0xf   : > { %v201_v4 = vld [vmem:[%s761_s23] sm:$0xf]  ;;  %v583_v5 = vld [vmem:[%s761_s23 + $0x4] sm:$0xf]  ;;  %v613_v11 = vld [vmem:[%s761_s23 + $0xc] sm:$0xf]  ;;  %260 = vmatpush.bf16.msra.mxu1 %v632_v20  ;;  %329 = vmatpush.bf16.msra.mxu3 %v634_v39  ;;  %s796_s8 = scalar_lea.vmem %s825_s3, %s572_s5 }
  0x10   : > { %v598_v35 = vld [vmem:[%s761_s23 + $0x8] sm:$0xf]  ;;  %vm340_vm3 = vcmask 126016   ;;  %vm413_vm4 = vcmask 191616   ;;  %vm486_vm5 = vcmask 257216  }
  0x13   : > { %368 = vmatpush.bf16.xpose.msrb.mxu1 %v359_v27  ;;  %402 = vmatpush.bf16.msrb.mxu3 %v636_v1 }
  0x15   : > { %577 = vmatmul.msk.bf16.vlgmr.msra.gmra.mxu0 %vm211_vm0, %v201_v4  ;;  %592 = vmatmul.msk.bf16.vlgmr.msra.gmra.mxu2 %vm211_vm0, %v583_v5 }
  0x16   : > { %441 = vmatpush.bf16.xpose.msrb.mxu0 %v432_v10  ;;  %475 = vmatpush.bf16.msrb.mxu2 %v638_v55 }
  0x25   : > { %622 = vmatmul.msk.bf16.vlgmr.msrb.gmra.mxu0 %vm211_vm0, %v613_v11 }
  0x92   : > { %v227_v6 = vpop.f32.mrf.mxu0 }
  0x93   : > { %v232_v7 = vsel %vm231_vm1, %v227_v6, -inf }
  0x94   : > { %233 = vmax.xlane.f32.xlu0 %v232_v7 }
  0x98   : > { %v297_v12 = vpop.f32.mrf.mxu2 }
  0x99   : > { %v301_v13 = vsel %vm231_vm1, %v297_v12, -inf }
  0x9a   : > { %v229_v8 = vpop.f32.mrf.mxu0  ;;  %302 = vmax.xlane.f32.xlu1 %v301_v13 }
  0xa0   : > { %v299_v14 = vpop.f32.mrf.mxu2 }
  0xa2   : > { %v443_v24 = vpop.f32.mrf.mxu0 }
  0xa3   : > { %v447_v25 = vsel %vm231_vm1, %v443_v24, -inf }
  0xa4   : > { %448 = vmax.xlane.f32.xlu2 %v447_v25 }
  0xaa   : > { %v445_v30 = vpop.f32.mrf.mxu0 }
 0x107   : > { %v234_v15 = vpop.xlane.xlu0 %233 }
 0x108   : > { %v235_v16 = vsub.f32 %v227_v6, %v234_v15 }
 0x10a   : > { %v236_v17 = vmul.f32 1.442695, %v235_v16 }
 0x10c   : > { %666 = vpow2.f32 %v236_v17 }
 0x10d   : > { %v303_v21 = vpop.xlane.xlu1 %302 }
 0x10e   : > { %v304_v22 = vsub.f32 %v297_v12, %v303_v21 }
 0x110   : > { %v305_v23 = vmul.f32 1.442695, %v304_v22 }
 0x112   : > { %v667_v18 = vpop.eup %666  ;;  %668 = vpow2.f32 %v305_v23 }
 0x113   : > { %v238_v19 = vsel %vm231_vm1, %v667_v18, 0.0 }
 0x114   : > { %239 = vadd.xlane.f32.xlu0 %v238_v19 }
 0x117   : > { %v449_v36 = vpop.xlane.xlu2 %448 }
 0x118   : > { %v669_v28 = vpop.eup %668  ;;  %v450_v44 = vsub.f32 %v443_v24, %v449_v36 }
 0x119   : > { %v307_v29 = vsel %vm231_vm1, %v669_v28, 0.0 }
 0x11a   : > { %308 = vadd.xlane.f32.xlu2 %v307_v29  ;;  %v451_v46 = vmul.f32 1.442695, %v450_v44 }
 0x187   : > { %v240_v31 = vpop.xlane.xlu0 %239 }
 0x188   : > { %670 = vrcp.f32 %v240_v31 }
 0x18d   : > { %v309_v37 = vpop.xlane.xlu2 %308 }
 0x18e   : > { %v671_v32 = vpop.eup %670  ;;  %672 = vrcp.f32 %v309_v37 }
 0x18f   : > { %v242_v33 = vmul.f32 %v671_v32, %v667_v18  ;;  %674 = vpow2.f32 %v451_v46 }
 0x191   : > { %v243_v34 = vpack.c.bf16 %v242_v33, %v242_v33 }
 0x193   : > { %582 = vmatmul.msk.bf16.vlgmr.msra.gmra.mxu1 %vm231_vm1, %v243_v34 }
 0x194   : > { %v673_v38 = vpop.eup %672 }
 0x195   : > { %v311_v40 = vmul.f32 %v673_v38, %v669_v28  ;;  %v675_v49 = vpop.eup %674 }
 0x196   : > { %v453_v50 = vsel %vm231_vm1, %v675_v49, 0.0 }
 0x197   : > { %v312_v41 = vpack.c.bf16 %v311_v40, %v311_v40 }
 0x199   : > { %597 = vmatmul.msk.bf16.vlgmr.msra.gmra.mxu3 %vm231_vm1, %v312_v41 }
 0x1a3   : > { %607 = vmatmul.msk.bf16.vlgmr.msrb.gmra.mxu1 %vm211_vm0, %v598_v35 }
 0x210   : > { %v262_v42 = vpop.f32.mrf.mxu1 }
 0x211   : > { %v266_v43 = vpack.c.bf16 %v262_v42, %v262_v42 }
 0x213   : > { %268 = vst.msk [vmem:[%s796_s8] sm:$0xf] %vm267_vm2, %v266_v43 }
 0x218   : > { %v264_v45 = vpop.f32.mrf.mxu1 }
 0x21c   : > { %v331_v52 = vpop.f32.mrf.mxu3 }
 0x21d   : > { %v335_v53 = vpack.c.bf16 %v331_v52, %v331_v52 }
 0x21f   : > { %337 = vrot.lane.b32.xlu2 %v335_v53, %s706_s9 }
 0x220   : > { %v370_v47 = vpop.f32.mrf.mxu1 }
 0x221   : > { %v374_v48 = vsel %vm231_vm1, %v370_v47, -inf }
 0x222   : > { %375 = vmax.xlane.f32.xlu1 %v374_v48 }
 0x224   : > { %v333_v54 = vpop.f32.mrf.mxu3 }
 0x228   : > { %v372_v51 = vpop.f32.mrf.mxu1 }
 0x22a   : > { %454 = vadd.xlane.f32.xlu1 %v453_v50 }
 0x279   : > { %v338_v2 = vpop.permute.xlu2 %337 }
 0x27a   : > { %341 = vst.msk [vmem:[%s796_s8] sm:$0xf] %vm340_vm3, %v338_v2 }
 0x295   : > { %v376_v56 = vpop.xlane.xlu1 %375 }
 0x296   : > { %v377_v57 = vsub.f32 %v370_v47, %v376_v56 }
 0x298   : > { %v378_v58 = vmul.f32 1.442695, %v377_v57 }
 0x29a   : > { %676 = vpow2.f32 %v378_v58 }
 0x29d   : > { %v455_v59 = vpop.xlane.xlu1 %454 }
 0x29e   : > { %678 = vrcp.f32 %v455_v59 }
 0x2a0   : > { %v677_v60 = vpop.eup %676 }
 0x2a1   : > { %v380_v61 = vsel %vm231_vm1, %v677_v60, 0.0 }
 0x2a2   : > { %381 = vadd.xlane.f32.xlu0 %v380_v61 }
 0x2a4   : > { %v679_v62 = vpop.eup %678 }
 0x2a5   : > { %v457_v63 = vmul.f32 %v679_v62, %v675_v49 }
 0x2a7   : > { %v458_v0 = vpack.c.bf16 %v457_v63, %v457_v63 }
 0x2a9   : > { %627 = vmatmul.msk.bf16.vlgmr.msrb.gmra.mxu2 %vm231_vm1, %v458_v0 }
 0x315   : > { %v382_v3 = vpop.xlane.xlu0 %381 }
 0x316   : > { %680 = vrcp.f32 %v382_v3 }
 0x31c   : > { %v681_v4 = vpop.eup %680 }
 0x31d   : > { %v384_v5 = vmul.f32 %v681_v4, %v677_v60 }
 0x31f   : > { %v385_v6 = vpack.c.bf16 %v384_v5, %v384_v5 }
 0x321   : > { %612 = vmatmul.msk.bf16.vlgmr.msrb.gmra.mxu3 %vm231_vm1, %v385_v6 }
 0x32c   : > { %v477_v7 = vpop.f32.mrf.mxu2 }
 0x32d   : > { %v481_v8 = vpack.c.bf16 %v477_v7, %v477_v7 }
 0x32f   : > { %483 = vrot.lane.b32.xlu1 %v481_v8, %s707_s17 }
 0x334   : > { %v479_v9 = vpop.f32.mrf.mxu2 }
 0x3a1   : > { %v484_v14 = vpop.permute.xlu1 %483 }
 0x3a4   : > { %v404_v10 = vpop.f32.mrf.mxu3 }
 0x3a5   : > { %v408_v11 = vpack.c.bf16 %v404_v10, %v404_v10 }
 0x3a7   : > { %410 = vrot.lane.b32.xlu0 %v408_v11, %s708_s18 }
 0x3ac   : > { %v406_v12 = vpop.f32.mrf.mxu3 }
 0x419   : > { %v411_v13 = vpop.permute.xlu0 %410 }
 0x41a   : > { %414 = vst.msk [vmem:[%s796_s8] sm:$0xf] %vm413_vm4, %v411_v13 }
 0x41b   : > { %487 = vst.msk [vmem:[%s796_s8] sm:$0xf] %vm486_vm5, %v484_v14 }
 0x41c PF: > { %s13_s14 = sadd.s32 1, %s704_s14   ;;  %s826_s12 = smov %s700_s13 }
 0x41d   : > { %p10_p5 = scmp.ge.s32.totalorder %s13_s14, 4   ;;  %s827_s13 = smov %s829_s15 }
 0x41f   :  { %12 = sbr.rel (!%p10_p5) target bundleno = 2 (0x2), region = 71 }

</bundles_post_ra>
